<compile_context>
chip_gen: v7x
topology: tpu7x:2x2x1
jax: 0.10.0
libtpu: 0.0.40
codegen_flags: <defaults>
</compile_context>

<pallas_src>
import jax
import jax.numpy as jnp
from jax.experimental import pallas as pl
from jax.experimental.pallas import tpu as pltpu


_TN_MAX = 2048          # max pixel-tile width (lanes); multiple of 128
_P_DROP = 0.7           # Dropout2d probability from the module
_BN_EPS = 1e-5          # BatchNorm2d default eps


def _conv_gru_kernel(x_ref, h_ref, scale_ref, shift_ref, wx_ref, wh_ref, b_ref,
                     o_ref):
    """One ConvGRUCell step (1x1 conv) on a (channels, pixel-tile) block.

    x_ref     : (1, Cin_pad, TN) bf16  input channels for this pixel tile
    h_ref     : (1, Ch, TN)      f32   previous *raw* (pre-BN/dropout) state
    scale_ref : (1, Ch, 1)       f32   fused BatchNorm+Dropout2d scale
    shift_ref : (1, Ch, 1)       f32   fused BatchNorm+Dropout2d shift
    wx_ref    : (2*Ch, Cin_pad)  bf16  [update; candidate] x-weights (resident)
    wh_ref    : (2*Ch, Ch)       bf16  [update; candidate] h-weights (resident)
    b_ref     : (2*Ch, 1)        f32   [update; candidate] bias (resident)
    o_ref     : (1, Ch, TN)      f32   next raw hidden state
    """
    ch = o_ref.shape[1]

    # Recover the actual recurrent state the PyTorch module feeds to the cell:
    # h_cur = Dropout2d(BatchNorm2d(h_raw)), expressed as a per-channel affine.
    h_cur = h_ref[0] * scale_ref[0] + shift_ref[0]                 # (Ch, TN) f32

    gates = (
        jnp.dot(wx_ref[...], x_ref[0], preferred_element_type=jnp.float32)
        + jnp.dot(wh_ref[...], h_cur.astype(jnp.bfloat16),
                  preferred_element_type=jnp.float32)
        + b_ref[...]
    )                                                              # (2*Ch, TN)

    z = jax.nn.sigmoid(gates[:ch, :])    # update gate (sublane slice, 8-aligned)
    n = jnp.tanh(gates[ch:, :])          # candidate state
    # The reset gate of the original conv is dead code in the module's forward;
    # its weight rows were dropped in pack_params, so it is never computed.
    o_ref[0] = ((1.0 - z) * h_cur + z * n).astype(o_ref.dtype)


def _pick_tn(hw, batch):
    """Pixel-tile width: lane-dense (multiple of 128) and as large as practical,
    but keep >= 2 total grid steps so v7x's two TensorCores both get work."""
    if hw <= 128:
        return hw                         # full extent is always a legal block
    tn = min(_TN_MAX, (hw // 128) * 128)
    if batch == 1:
        while tn > 128 and -(-hw // tn) < 2:
            tn = max(128, ((tn // 2) // 128) * 128)
    return tn


def _make_gru_step(batch, ch, cin_pad, hw, tn):
    """Build the pallas_call for one fused BN/dropout + ConvGRU step."""
    grid = (batch, pl.cdiv(hw, tn))
    return pl.pallas_call(
        _conv_gru_kernel,
        out_shape=jax.ShapeDtypeStruct((batch, ch, hw), jnp.float32),
        grid_spec=pltpu.PrefetchScalarGridSpec(
            num_scalar_prefetch=0,
            grid=grid,
            in_specs=[
                pl.BlockSpec((1, cin_pad, tn), lambda b, j: (b, 0, j)),  # x tile
                pl.BlockSpec((1, ch, tn), lambda b, j: (b, 0, j)),       # h_raw
                pl.BlockSpec((1, ch, 1), lambda b, j: (b, 0, 0)),        # scale
                pl.BlockSpec((1, ch, 1), lambda b, j: (b, 0, 0)),        # shift
                pl.BlockSpec((2 * ch, cin_pad), lambda b, j: (0, 0)),    # Wx
                pl.BlockSpec((2 * ch, ch), lambda b, j: (0, 0)),         # Wh
                pl.BlockSpec((2 * ch, 1), lambda b, j: (0, 0)),          # bias
            ],
            out_specs=pl.BlockSpec((1, ch, tn), lambda b, j: (b, 0, j)),
        ),
        compiler_params=pltpu.CompilerParams(
            dimension_semantics=("parallel", "parallel"),
            vmem_limit_bytes=32 * 1024 * 1024,
        ),
    )


def pack_params(conv_w, conv_b, gamma, beta, input_channels):
    """Pack PyTorch parameters for the kernel.

    conv_w: (3*Ch, Cin+Ch) 1x1-conv weight (spatial 1x1 dims squeezed)
    conv_b: (3*Ch,) conv bias; gamma/beta: (Ch,) BatchNorm2d affine.

    Drops the dead reset-gate third (rows Ch:2*Ch are produced by the conv but
    never used by the module's forward), splits the remaining rows into x / h
    column blocks, zero-pads Cin up to a multiple of 8 for sublane alignment
    and casts the matmul weights to bfloat16.
    """
    ch = gamma.shape[0]
    cin = input_channels
    rows = jnp.concatenate([conv_w[:ch], conv_w[2 * ch:]], axis=0)  # (2Ch, Cin+Ch)
    cin_pad = max(8, ((cin + 7) // 8) * 8)
    wx = jnp.pad(rows[:, :cin], ((0, 0), (0, cin_pad - cin))).astype(jnp.bfloat16)
    wh = rows[:, cin:].astype(jnp.bfloat16)
    b2 = jnp.concatenate([conv_b[:ch], conv_b[2 * ch:]])[:, None].astype(jnp.float32)
    return wx, wh, b2, gamma.astype(jnp.float32), beta.astype(jnp.float32)


def _bn_dropout_affine(h_raw, gamma, beta, keep, eps):
    """Training-mode BatchNorm2d (batch statistics) + Dropout2d folded into a
    per-(batch, channel) affine applied to the raw cell output.

    h_raw: (B, Ch, H*W); keep: (B, Ch) with values 0 or 1/(1-p).
    """
    # TODO(synk): BatchNorm2d's running-stats update (training bookkeeping) is
    # not tracked; it does not affect the forward output.
    mean = jnp.mean(h_raw, axis=(0, 2))
    var = jnp.maximum(jnp.mean(jnp.square(h_raw), axis=(0, 2)) - mean * mean, 0.0)
    inv = jax.lax.rsqrt(var + eps)
    bn_scale = gamma * inv
    bn_shift = beta - mean * bn_scale
    scale = (keep * bn_scale[None, :])[:, :, None]                  # (B, Ch, 1)
    shift = (keep * bn_shift[None, :])[:, :, None]
    return scale, shift


def conv_encoder_forward(input_tensor, params, keep_masks, *, eps=_BN_EPS):
    """ConvEncoder.forward: returns (last_state, h), both (B, Ch, H, W).

    input_tensor: (B, T, Cin, H, W) float32
    params:       output of pack_params
    keep_masks:   (T, B, Ch) Dropout2d channel masks, pre-scaled by 1/(1-p)
    """
    wx, wh, b2, gamma, beta = params
    bsz, seq_len, cin, height, width = input_tensor.shape
    ch = gamma.shape[0]
    hw = height * width
    cin_pad = wx.shape[1]

    # NCHW stays NCHW; only flatten the spatial dims (a view, no transpose) and
    # zero-pad / cast the input channels once for the whole sequence.
    x = input_tensor.reshape(bsz, seq_len, cin, hw)
    x = jnp.pad(x, ((0, 0), (0, 0), (0, cin_pad - cin), (0, 0))).astype(jnp.bfloat16)

    tn = _pick_tn(hw, bsz)
    gru_step = _make_gru_step(bsz, ch, cin_pad, hw, tn)

    # init_hidden: zeros; identity affine (nothing to normalize/drop yet).
    h_raw = jnp.zeros((bsz, ch, hw), jnp.float32)
    scale = jnp.ones((bsz, ch, 1), jnp.float32)
    shift = jnp.zeros((bsz, ch, 1), jnp.float32)

    for t in range(seq_len):                     # unrolled under jit (T small)
        h_raw = gru_step(x[:, t], h_raw, scale, shift, wx, wh, b2)
        scale, shift = _bn_dropout_affine(h_raw, gamma, beta, keep_masks[t], eps)

    h_out = (h_raw * scale + shift).reshape(bsz, ch, height, width)
    return h_out, h_out     # last_state and h are the same tensor at t = T-1


def _reference_forward(input_tensor, conv_w, conv_b, gamma, beta, keep_masks,
                       eps=_BN_EPS):
    """Pure-JAX op-for-op mirror of the PyTorch ConvEncoder.forward (training).

    cat([x, h]) -> 1x1 conv (all three gate blocks; the reset gate is produced
    but never used by the module) -> sigmoid/tanh gating -> convex update ->
    BatchNorm2d with batch statistics -> Dropout2d with the given masks.  The
    conv operands are cast to bf16 to mirror the kernel's documented MXU
    precision; everything else is float32.
    """
    bsz, seq_len, cin, height, width = input_tensor.shape
    ch = gamma.shape[0]
    hw = height * width
    x = input_tensor.reshape(bsz, seq_len, cin, hw)
    h = jnp.zeros((bsz, ch, hw), jnp.float32)
    for t in range(seq_len):
        combined = jnp.concatenate([x[:, t], h], axis=1)        # (B, Cin+Ch, HW)
        conv = jnp.einsum(
            "ok,bkn->bon", conv_w.astype(jnp.bfloat16),
            combined.astype(jnp.bfloat16),
            preferred_element_type=jnp.float32) + conv_b[None, :, None]
        z = jax.nn.sigmoid(conv[:, :ch])
        # conv[:, ch:2*ch] is the reset gate: computed by the conv, unused.
        n = jnp.tanh(conv[:, 2 * ch:])
        h = (1.0 - z) * h + z * n
        scale, shift = _bn_dropout_affine(h, gamma, beta, keep_masks[t], eps)
        h = h * scale + shift
    out = h.reshape(bsz, ch, height, width)
    return out, out


if __name__ == "__main__":
    # Small shapes consistent with the module: ConvEncoder(input_channels=1,
    # hidden_channels=32, kernel_size=1) on a (batch=2, seq=5, 1, 16, 16) input
    # (the full-size spec is (1, 5, 1, 224, 224) with hidden_channels=128).
    B, T, CIN, H, W = 2, 5, 1, 16, 16
    HIDDEN = 32
    CH = HIDDEN // 2          # ConvEncoder builds ConvGRUCell(hidden_channels // 2)

    key = jax.random.PRNGKey(0)
    k_x, k_w, k_b, k_drop, k_h, k_s, k_sh = jax.random.split(key, 7)

    input_tensor = jax.random.uniform(k_x, (B, T, CIN, H, W), dtype=jnp.float32)

    # Conv2d(CIN+CH -> 3*CH, kernel=1) default init: U(+/- 1/sqrt(fan_in)).
    bound = float(CIN + CH) ** -0.5
    conv_w = jax.random.uniform(k_w, (3 * CH, CIN + CH), jnp.float32, -bound, bound)
    conv_b = jax.random.uniform(k_b, (3 * CH,), jnp.float32, -bound, bound)
    gamma = jnp.ones((CH,), jnp.float32)      # BatchNorm2d affine defaults
    beta = jnp.zeros((CH,), jnp.float32)

    # Dropout2d(p=0.7) training-mode channel masks, pre-scaled by 1/(1-p).
    # TODO(synk): PyTorch's dropout RNG stream cannot be reproduced in JAX; the
    # masks are drawn with JAX RNG and shared by the kernel path and reference.
    keep = jax.random.bernoulli(k_drop, 1.0 - _P_DROP, (T, B, CH))
    keep_masks = keep.astype(jnp.float32) / (1.0 - _P_DROP)

    params = pack_params(conv_w, conv_b, gamma, beta, CIN)

    last_state, h_last = jax.jit(conv_encoder_forward)(input_tensor, params,
                                                       keep_masks)
    last_state = jax.block_until_ready(last_state)
    assert last_state.shape == (B, CH, H, W) and h_last.shape == (B, CH, H, W)

    # --- Check 1: the Pallas GRU-cell kernel against a direct jnp formula -----
    wx, wh, b2, _, _ = params
    hw = H * W
    tn = _pick_tn(hw, B)
    x0 = jnp.pad(input_tensor.reshape(B, T, CIN, hw)[:, 0],
                 ((0, 0), (0, wx.shape[1] - CIN), (0, 0))).astype(jnp.bfloat16)
    h_rand = jax.random.normal(k_h, (B, CH, hw), jnp.float32)
    s_rand = jax.random.uniform(k_s, (B, CH, 1), jnp.float32, 0.5, 1.5)
    sh_rand = 0.1 * jax.random.normal(k_sh, (B, CH, 1), jnp.float32)
    got = _make_gru_step(B, CH, wx.shape[1], hw, tn)(
        x0, h_rand, s_rand, sh_rand, wx, wh, b2)
    h_cur = h_rand * s_rand + sh_rand
    gates = (jnp.einsum("oc,bcn->bon", wx, x0, preferred_element_type=jnp.float32)
             + jnp.einsum("oc,bcn->bon", wh, h_cur.astype(jnp.bfloat16),
                          preferred_element_type=jnp.float32) + b2[None])
    zg = jax.nn.sigmoid(gates[:, :CH])
    want = (1.0 - zg) * h_cur + zg * jnp.tanh(gates[:, CH:])
    assert jnp.allclose(got, want, atol=1e-4, rtol=1e-3), (
        "cell kernel mismatch: %e" % float(jnp.max(jnp.abs(got - want))))

    # --- Check 2: full encoder against the op-for-op reference ---------------
    # Both paths use bf16 matmul operands; the residual difference is only
    # MXU-vs-XLA accumulation order and transcendental ulp differences,
    # amplified by BatchNorm's 1/sigma across the 5-step recurrence, hence the
    # small slack.
    ref_last, ref_h = _reference_forward(input_tensor, conv_w, conv_b, gamma,
                                         beta, keep_masks)
    assert jnp.allclose(last_state, ref_last, atol=2e-2, rtol=2e-2), (
        "encoder mismatch: %e" % float(jnp.max(jnp.abs(last_state - ref_last))))
    assert jnp.allclose(h_last, ref_h, atol=2e-2, rtol=2e-2)

    print("KERNEL_OK")
</pallas_src>

<mosaic_0001>
module attributes {stable_mosaic.version = 11 : i64} {
  func.func @_conv_gru_kernel(%arg0: i32, %arg1: i32, %arg2: memref<1x8x256xbf16, #tpu.memory_space<vmem>>, %arg3: memref<1x16x256xf32, #tpu.memory_space<vmem>>, %arg4: memref<1x16x1xf32, #tpu.memory_space<vmem>>, %arg5: memref<1x16x1xf32, #tpu.memory_space<vmem>>, %arg6: memref<32x8xbf16, #tpu.memory_space<vmem>>, %arg7: memref<32x16xbf16, #tpu.memory_space<vmem>>, %arg8: memref<32x1xf32, #tpu.memory_space<vmem>>, %arg9: memref<1x16x256xf32, #tpu.memory_space<vmem>>) attributes {dimension_semantics = [#tpu.dimension_semantics<parallel>, #tpu.dimension_semantics<parallel>], iteration_bounds = array<i64: 2, 1>, scalar_prefetch = 0 : i64, scratch_operands = 0 : i64, tpu.core_type = #tpu.core_type<tc>, window_params = [{transform_indices = @transform_0, window_bounds = array<i64: 1, 8, 256>}, {transform_indices = @transform_1, window_bounds = array<i64: 1, 16, 256>}, {transform_indices = @transform_2, window_bounds = array<i64: 1, 16, 1>}, {transform_indices = @transform_3, window_bounds = array<i64: 1, 16, 1>}, {pipeline_mode = #tpu.pipeline_mode<synchronous>, transform_indices = @transform_4, window_bounds = array<i64: 32, 8>}, {pipeline_mode = #tpu.pipeline_mode<synchronous>, transform_indices = @transform_5, window_bounds = array<i64: 32, 16>}, {pipeline_mode = #tpu.pipeline_mode<synchronous>, transform_indices = @transform_6, window_bounds = array<i64: 32, 1>}, {transform_indices = @transform_7, window_bounds = array<i64: 1, 16, 256>}]} {
    %c0 = arith.constant 0 : index
    %c0_0 = arith.constant 0 : index
    %c0_1 = arith.constant 0 : index
    %0 = vector.load %arg3[%c0, %c0_0, %c0_1] : memref<1x16x256xf32, #tpu.memory_space<vmem>>, vector<1x16x256xf32>
    %1 = vector.shape_cast %0 : vector<1x16x256xf32> to vector<16x256xf32>
    %c0_2 = arith.constant 0 : index
    %c0_3 = arith.constant 0 : index
    %c0_4 = arith.constant 0 : index
    %2 = vector.load %arg4[%c0_2, %c0_3, %c0_4] : memref<1x16x1xf32, #tpu.memory_space<vmem>>, vector<1x16x1xf32>
    %3 = vector.shape_cast %2 : vector<1x16x1xf32> to vector<16x1xf32>
    %4 = vector.broadcast %3 : vector<16x1xf32> to vector<16x256xf32>
    %5 = arith.mulf %1, %4 : vector<16x256xf32>
    %c0_5 = arith.constant 0 : index
    %c0_6 = arith.constant 0 : index
    %c0_7 = arith.constant 0 : index
    %6 = vector.load %arg5[%c0_5, %c0_6, %c0_7] : memref<1x16x1xf32, #tpu.memory_space<vmem>>, vector<1x16x1xf32>
    %7 = vector.shape_cast %6 : vector<1x16x1xf32> to vector<16x1xf32>
    %8 = vector.broadcast %7 : vector<16x1xf32> to vector<16x256xf32>
    %9 = arith.addf %5, %8 : vector<16x256xf32>
    %c0_8 = arith.constant 0 : index
    %c0_9 = arith.constant 0 : index
    %10 = vector.load %arg6[%c0_8, %c0_9] : memref<32x8xbf16, #tpu.memory_space<vmem>>, vector<32x8xbf16>
    %c0_10 = arith.constant 0 : index
    %c0_11 = arith.constant 0 : index
    %c0_12 = arith.constant 0 : index
    %11 = vector.load %arg2[%c0_10, %c0_11, %c0_12] : memref<1x8x256xbf16, #tpu.memory_space<vmem>>, vector<1x8x256xbf16>
    %12 = vector.shape_cast %11 : vector<1x8x256xbf16> to vector<8x256xbf16>
    %cst = arith.constant dense<0.000000e+00> : vector<32x256xf32>
    %13 = tpu.matmul %10, %12, %cst {dimension_numbers = #tpu.dot_dimension_numbers<[1], [0], [0], [1], [0, 0, 1, 1], [], []>} : vector<32x8xbf16>, vector<8x256xbf16>, vector<32x256xf32> -> vector<32x256xf32>
    %c0_13 = arith.constant 0 : index
    %c0_14 = arith.constant 0 : index
    %14 = vector.load %arg7[%c0_13, %c0_14] : memref<32x16xbf16, #tpu.memory_space<vmem>>, vector<32x16xbf16>
    %15 = arith.truncf %9 : vector<16x256xf32> to vector<16x256xbf16>
    %cst_15 = arith.constant dense<0.000000e+00> : vector<32x256xf32>
    %16 = tpu.matmul %14, %15, %cst_15 {dimension_numbers = #tpu.dot_dimension_numbers<[1], [0], [0], [1], [0, 0, 1, 1], [], []>} : vector<32x16xbf16>, vector<16x256xbf16>, vector<32x256xf32> -> vector<32x256xf32>
    %17 = arith.addf %13, %16 : vector<32x256xf32>
    %c0_16 = arith.constant 0 : index
    %c0_17 = arith.constant 0 : index
    %18 = vector.load %arg8[%c0_16, %c0_17] : memref<32x1xf32, #tpu.memory_space<vmem>>, vector<32x1xf32>
    %19 = vector.broadcast %18 : vector<32x1xf32> to vector<32x256xf32>
    %20 = arith.addf %17, %19 : vector<32x256xf32>
    %21 = vector.extract_strided_slice %20 {offsets = [0, 0], sizes = [16, 256], strides = [1, 1]} : vector<32x256xf32> to vector<16x256xf32>
    %22 = arith.negf %21 : vector<16x256xf32>
    %23 = math.exp %22 : vector<16x256xf32>
    %cst_18 = arith.constant 1.000000e+00 : f32
    %24 = vector.broadcast %cst_18 : f32 to vector<16x256xf32>
    %25 = arith.addf %24, %23 : vector<16x256xf32>
    %26 = arith.divf %24, %25 : vector<16x256xf32>
    %27 = vector.extract_strided_slice %20 {offsets = [16, 0], sizes = [16, 256], strides = [1, 1]} : vector<32x256xf32> to vector<16x256xf32>
    %28 = math.tanh %27 : vector<16x256xf32>
    %cst_19 = arith.constant 1.000000e+00 : f32
    %29 = vector.broadcast %cst_19 : f32 to vector<16x256xf32>
    %30 = arith.subf %29, %26 : vector<16x256xf32>
    %31 = arith.mulf %30, %9 : vector<16x256xf32>
    %32 = arith.mulf %26, %28 : vector<16x256xf32>
    %33 = arith.addf %31, %32 : vector<16x256xf32>
    %c0_20 = arith.constant 0 : index
    %c0_21 = arith.constant 0 : index
    %c0_22 = arith.constant 0 : index
    %34 = vector.load %arg9[%c0_20, %c0_21, %c0_22] : memref<1x16x256xf32, #tpu.memory_space<vmem>>, vector<1x16x256xf32>
    %35 = vector.shape_cast %34 : vector<1x16x256xf32> to vector<16x256xf32>
    %36 = vector.shape_cast %33 : vector<16x256xf32> to vector<1x16x256xf32>
    tpu.vector_store %arg9[%c0_20, %c0_21, %c0_22], %36 {strides = array<i32>} : memref<1x16x256xf32, #tpu.memory_space<vmem>>, vector<1x16x256xf32>,
    return
  }
  func.func @transform_0(%arg0: i32, %arg1: i32) -> (i32, i32, i32) {
    %c0_i32 = arith.constant 0 : i32
    %c0_i32_0 = arith.constant 0 : i32
    return %arg0, %c0_i32, %arg1 : i32, i32, i32
  }
  func.func @transform_1(%arg0: i32, %arg1: i32) -> (i32, i32, i32) {
    %c0_i32 = arith.constant 0 : i32
    %c0_i32_0 = arith.constant 0 : i32
    return %arg0, %c0_i32, %arg1 : i32, i32, i32
  }
  func.func @transform_2(%arg0: i32, %arg1: i32) -> (i32, i32, i32) {
    %c0_i32 = arith.constant 0 : i32
    %c0_i32_0 = arith.constant 0 : i32
    %c0_i32_1 = arith.constant 0 : i32
    return %arg0, %c0_i32, %c0_i32_0 : i32, i32, i32
  }
  func.func @transform_3(%arg0: i32, %arg1: i32) -> (i32, i32, i32) {
    %c0_i32 = arith.constant 0 : i32
    %c0_i32_0 = arith.constant 0 : i32
    %c0_i32_1 = arith.constant 0 : i32
    return %arg0, %c0_i32, %c0_i32_0 : i32, i32, i32
  }
  func.func @transform_4(%arg0: i32, %arg1: i32) -> (i32, i32) {
    %c0_i32 = arith.constant 0 : i32
    %c0_i32_0 = arith.constant 0 : i32
    %c0_i32_1 = arith.constant 0 : i32
    return %c0_i32, %c0_i32_0 : i32, i32
  }
  func.func @transform_5(%arg0: i32, %arg1: i32) -> (i32, i32) {
    %c0_i32 = arith.constant 0 : i32
    %c0_i32_0 = arith.constant 0 : i32
    %c0_i32_1 = arith.constant 0 : i32
    return %c0_i32, %c0_i32_0 : i32, i32
  }
  func.func @transform_6(%arg0: i32, %arg1: i32) -> (i32, i32) {
    %c0_i32 = arith.constant 0 : i32
    %c0_i32_0 = arith.constant 0 : i32
    %c0_i32_1 = arith.constant 0 : i32
    return %c0_i32, %c0_i32_0 : i32, i32
  }
  func.func @transform_7(%arg0: i32, %arg1: i32) -> (i32, i32, i32) {
    %c0_i32 = arith.constant 0 : i32
    %c0_i32_0 = arith.constant 0 : i32
    return %arg0, %c0_i32, %arg1 : i32, i32, i32
  }
}

</mosaic_0001>

<bundles_post_ra>
// kernel: conv_encoder_forward.5
= control target key start
LH: loop header
LB: loop body
LE: loop exit
PB: predicated region body
PF: predicated region fallthrough
CT: control target
= control target key end

     0   :  { %s970_s24 = smov 0   ;;  %s972_s25 = smov 0   ;;  %s1067_s0 = inlined_call_operand.vmem [shape: bf16[2,8,256], index: 0, kind: input, shape index: {}]   ;;  %s1068_s1 = inlined_call_operand.vmem [shape: f32[2,16,256], index: 1, kind: input, shape index: {}]   ;;  %s1069_s2 = inlined_call_operand.vmem [shape: f32[2,16,1], index: 2, kind: input, shape index: {}]   ;;  %s1070_s3 = inlined_call_operand.vmem [shape: f32[2,16,1], index: 3, kind: input, shape index: {}]   ;;  %s1071_s4 = inlined_call_operand.vmem [shape: bf16[32,8], index: 4, kind: input, shape index: {}]   ;;  %s1072_s5 = inlined_call_operand.vmem [shape: bf16[32,16], index: 5, kind: input, shape index: {}]   ;;  %s1073_s6 = inlined_call_operand.vmem [shape: f32[32,1], index: 6, kind: input, shape index: {}]   ;;  %s1074_s7 = inlined_call_operand.vmem [shape: f32[2,16,256], index: 7, kind: output, shape index: {}]  }
   0x1   :  { %s974_s26 = smov 0  }
   0x2 LB: > { %s29_s27 = sadd.s32 1, %s923_s25  ;;  %p807_p0 = scmp.ge.s32.totalorder %s927_s26, 1  ;;  %s927_s26 = sphi %s974_s26, %s17_s26   ;;  %s923_s25 = sphi %s972_s25, %s1076_s25   ;;  %s919_s24 = sphi %s970_s24, %s1075_s24  }
   0x3   : > { %p31_p1 = scmp.ge.s32.totalorder %s29_s27, 2  ;;  %p295_p2 = scmp.lt.s32.totalorder %s927_s26, 3 }
   0x5   : > { %s1078_s27 = smov (%p31_p1, %s29_s27), 0  ;;  %p296_p3 = pnand %p807_p0, %p295_p2 }
   0x6   : > { %p355_p4 = scmp.lt.s32.totalorder (!%p296_p3), %s919_s24, 1  ;;  %v929_v0 = vmov (!%p296_p3), 0   ;;  %v595_v6 = vld [vmem:[%s1073_s6 + $0x8] sm:$0xff] (!%p296_p3)  ;;  %v594_v7 = vld [vmem:[%s1073_s6] sm:$0xff] (!%p296_p3)  ;;  %vm534_vm0 = vcmask (!%p296_p3), 1043456   ;;  %v597_v11 = vld [vmem:[%s1073_s6 + $0x18] sm:$0xff] (!%p296_p3) }
   0x7   : > { %299 = sbr.rel (%p296_p3) target bundleno = 413 (0x19d), region = 48  ;;  %874 = vset.pattern.permute.xlu1 (!%p296_p3), %v929_v0  ;;  %873 = vset.pattern.permute.xlu0 (!%p296_p3), %v929_v0  ;;  %v596_v12 = vld [vmem:[%s1073_s6 + $0x10] sm:$0xff] (!%p296_p3)  ;;  %v877_v13 = vld [vmem:[%s1071_s4] sm:$0xff] (!%p296_p3)   ;;  %vm527_vm1 = vcmask (!%p296_p3), 64512   ;;  %v880_v14 = vld [vmem:[%s1071_s4 + $0x8] sm:$0xff] (!%p296_p3)   ;;  %vm452_vm2 = vcmask (!%p296_p3), 130048  }
   0x8   : > { %573 = vmatprep.mubr.bf16.mxu0 (!%p296_p3), %v929_v0  ;;  %491 = vmatprep.mubr.bf16.mxu1 (!%p296_p3), %v929_v0  ;;  %v878_v33 = vld [vmem:[%s1072_s5] sm:$0xff] (!%p296_p3)   ;;  %v879_v34 = vld [vmem:[%s1072_s5 + $0x8] sm:$0xff] (!%p296_p3)  }
   0xe   : > { %s1080_s24 = smov (!%p355_p4, %s919_s24), 1 }
   0xf   : > { %s837_s28 = sshll.u32 %s1080_s24, 4  ;;  %s835_s12 = sshll.u32 %s1080_s24, 3 }
  0x10   : > { %s383_s8 = scalar_lea.vmem %s1070_s3, %s837_s28  ;;  %s378_s11 = scalar_lea.vmem %s1069_s2, %s837_s28 }
  0x11   : > { %v415_v1 = vld [vmem:[%s383_s8] sm:$0xff]  ;;  %v416_v3 = vld [vmem:[%s383_s8 + $0x8] sm:$0xff]  ;;  %s362_s15 = scalar_lea.vmem %s1067_s0, %s835_s12  ;;  %s836_s9 = sshll.u32 %s1080_s24, 5 }
  0x12   : > { %v399_v2 = vld [vmem:[%s378_s11] sm:$0xff]  ;;  %419 = vperm.xlu1 %874, %v415_v1   ;;  %v400_v4 = vld [vmem:[%s378_s11 + $0x8] sm:$0xff]  ;;  %s372_s12 = scalar_lea.vmem %s1068_s1, %s836_s9  ;;  %s392_s19 = scalar_lea.vmem %s1074_s7, %s836_s9 }
  0x13   : > { %403 = vperm.xlu0 %873, %v399_v2   ;;  %v435_v5 = vld [vmem:[%s362_s15] sm:$0xff]  ;;  %v396_v18 = vld [vmem:[%s372_s12 + $0x8] sm:$0xff]  ;;  %v397_v19 = vld [vmem:[%s372_s12 + $0x10] sm:$0xff] }
  0x14   : > { %v825_v8 = vcombine.high %v435_v5, %v435_v5  ;;  %v824_v9 = vcombine.low %v435_v5, %v435_v5  ;;  %v395_v17 = vld [vmem:[%s372_s12] sm:$0xff]  ;;  %v398_v20 = vld [vmem:[%s372_s12 + $0x18] sm:$0xff] }
  0x16   : > { %424 = vperm.xlu1 %874, %v416_v3   ;;  %826 = vmatprep.subr.msk.bf16.mxu0 %vm534_vm0, %v825_v8  ;;  %v536_v10 = vsel %vm534_vm0, %v824_v9, 0 }
  0x17   : > { %408 = vperm.xlu0 %873, %v400_v4   ;;  %542 = vmatpush1.bf16.msra.mxu0 %v536_v10 }
  0x1a   : > { %605 = vperm.xlu1 %874, %v595_v6   ;;  %827 = vmatmul.mubr.msk.bf16.vlgmr.msra.gmra.mrb[0].mxu0 %vm527_vm1, %v877_v13 }
  0x1b   : > { %600 = vperm.xlu0 %873, %v594_v7   ;;  %583 = vmatprep.mubr.bf16.mxu0 %v929_v0 }
  0x1e   : > { %615 = vperm.xlu1 %874, %v597_v11  }
  0x1f   : > { %610 = vperm.xlu0 %873, %v596_v12  }
  0x22   : > { %828 = vmatmul.mubr.msk.bf16.gmra.mrb[4].mxu0 %vm527_vm1, %v880_v14 }
  0x91   : > { %v420_v15 = vpop.permute.xlu1 %419 }
  0x92   : > { %v404_v16 = vpop.permute.xlu0 %403 }
  0x93   : > { %v411_v21 = vmul.f32 %v404_v16, %v395_v17  ;;  %v412_v22 = vmul.f32 %v404_v16, %v396_v18 }
  0x95   : > { %v425_v26 = vpop.permute.xlu1 %424  ;;  %v1030_v27 = vadd.f32 %v420_v15, %v412_v22  ;;  %v1034_v29 = vadd.f32 %v420_v15, %v411_v21 }
  0x96   : > { %v409_v23 = vpop.permute.xlu0 %408 }
  0x97   : > { %v413_v24 = vmul.f32 %v409_v23, %v397_v19  ;;  %v414_v25 = vmul.f32 %v409_v23, %v398_v20 }
  0x99   : > { %v1032_v28 = vadd.f32 %v425_v26, %v414_v25  ;;  %v1036_v30 = vadd.f32 %v425_v26, %v413_v24  ;;  %v606_v52 = vpop.permute.xlu1 %605 }
  0x9a   : > { %v601_v46 = vpop.permute.xlu0 %600 }
  0x9b   : > { %v441_v31 = vpack.c.bf16 %v1032_v28, %v1030_v27  ;;  %v440_v32 = vpack.c.bf16 %v1036_v30, %v1034_v29 }
  0x9d   : > { %459 = vmatprep.subr.bf16.mxu1 %v441_v31  ;;  %v616_v7 = vpop.permute.xlu1 %615 }
  0x9e   : > { %460 = vmatpush1.bf16.msra.mxu1 %v440_v32  ;;  %v611_v2 = vpop.permute.xlu0 %610 }
  0xa1   : > { %820 = vmatmul.mubr.msk.bf16.vlgmr.msra.gmra.mrb[0].mxu1 %vm452_vm2, %v878_v33 }
  0xa2   : > { %501 = vmatprep.mubr.bf16.mxu1 %v929_v0 }
  0xa9   : > { %821 = vmatmul.mubr.msk.bf16.gmra.mrb[4].mxu1 %vm452_vm2, %v879_v34 }
  0xed   : > { %v575_v35 = vpop.f32.mrb[0].mxu0 }
  0xee   : > { %v577_v36 = vpop.f32.mrb[1].mxu0 }
  0xef   : > { %v579_v37 = vpop.f32.mrb[2].mxu0 }
  0xf0   : > { %v581_v38 = vpop.f32.mrb[3].mxu0 }
  0xf5   : > { %v585_v39 = vpop.f32.mrb[4].mxu0 }
  0xf6   : > { %v587_v40 = vpop.f32.mrb[5].mxu0 }
  0xf7   : > { %v589_v41 = vpop.f32.mrb[6].mxu0 }
  0xf8   : > { %v591_v42 = vpop.f32.mrb[7].mxu0 }
 0x174   : > { %v493_v43 = vpop.f32.mrb[0].mxu1 }
 0x175   : > { %v576_v44 = vadd.f32 %v575_v35, %v493_v43  ;;  %v495_v45 = vpop.f32.mrb[1].mxu1 }
 0x176   : > { %v578_v47 = vadd.f32 %v577_v36, %v495_v45  ;;  %v497_v48 = vpop.f32.mrb[2].mxu1 }
 0x177   : > { %v618_v49 = vadd.f32 %v601_v46, %v576_v44  ;;  %v580_v50 = vadd.f32 %v579_v37, %v497_v48  ;;  %v499_v51 = vpop.f32.mrb[3].mxu1 }
 0x178   : > { %v619_v53 = vadd.f32 %v601_v46, %v578_v47  ;;  %v582_v54 = vadd.f32 %v581_v38, %v499_v51 }
 0x179   : > { %v829_v55 = vmul.f32 -1.442695, %v618_v49  ;;  %v620_v56 = vadd.f32 %v606_v52, %v580_v50 }
 0x17a   : > { %v830_v57 = vmul.f32 -1.442695, %v619_v53  ;;  %v621_v58 = vadd.f32 %v606_v52, %v582_v54 }
 0x17b   : > { %881 = vpow2.f32 %v829_v55  ;;  %v831_v59 = vmul.f32 -1.442695, %v620_v56 }
 0x17c   : > { %883 = vpow2.f32 %v830_v57  ;;  %v832_v60 = vmul.f32 -1.442695, %v621_v58  ;;  %v503_v61 = vpop.f32.mrb[4].mxu1 }
 0x17d   : > { %885 = vpow2.f32 %v831_v59  ;;  %v586_v62 = vadd.f32 %v585_v39, %v503_v61  ;;  %v505_v63 = vpop.f32.mrb[5].mxu1 }
 0x17e   : > { %887 = vpow2.f32 %v832_v60  ;;  %v588_v0 = vadd.f32 %v587_v40, %v505_v63  ;;  %v507_v1 = vpop.f32.mrb[6].mxu1 }
 0x17f   : > { %v590_v3 = vadd.f32 %v589_v41, %v507_v1  ;;  %v509_v4 = vpop.f32.mrb[7].mxu1  ;;  %v622_v5 = vadd.f32 %v611_v2, %v586_v62 }
 0x180   : > { %v592_v6 = vadd.f32 %v591_v42, %v509_v4  ;;  %v623_v8 = vadd.f32 %v611_v2, %v588_v0 }
 0x181   : > { %v624_v9 = vadd.f32 %v616_v7, %v590_v3  ;;  %889 = vtanh.f32 %v622_v5 }
 0x182   : > { %v625_v10 = vadd.f32 %v616_v7, %v592_v6  ;;  %891 = vtanh.f32 %v623_v8 }
 0x183   : > { %893 = vtanh.f32 %v624_v9 }
 0x184   : > { %895 = vtanh.f32 %v625_v10 }
 0x185   : > { %v882_v11 = vpop.eup %881 }
 0x186   : > { %v884_v12 = vpop.eup %883  ;;  %v638_v13 = vadd.f32 1.0, %v882_v11 }
 0x187   : > { %v886_v14 = vpop.eup %885  ;;  %v639_v15 = vadd.f32 1.0, %v884_v12 }
 0x188   : > { %v888_v16 = vpop.eup %887  ;;  %897 = vrcp.f32 %v638_v13  ;;  %v640_v17 = vadd.f32 1.0, %v886_v14 }
 0x189   : > { %899 = vrcp.f32 %v639_v15  ;;  %v641_v18 = vadd.f32 1.0, %v888_v16 }
 0x18a   : > { %901 = vrcp.f32 %v640_v17 }
 0x18b   : > { %903 = vrcp.f32 %v641_v18  ;;  %v890_v19 = vpop.eup %889 }
 0x18c   : > { %v892_v20 = vpop.eup %891 }
 0x18d   : > { %v894_v21 = vpop.eup %893 }
 0x18e   : > { %v896_v22 = vpop.eup %895 }
 0x192   : > { %v898_v23 = vpop.eup %897 }
 0x193   : > { %v900_v24 = vpop.eup %899  ;;  %v654_v25 = vsub.f32 1.0, %v898_v23  ;;  %v662_v26 = vmul.f32 %v898_v23, %v890_v19 }
 0x194   : > { %v902_v31 = vpop.eup %901  ;;  %v655_v32 = vsub.f32 1.0, %v900_v24  ;;  %v663_v33 = vmul.f32 %v900_v24, %v892_v20 }
 0x195   : > { %v904_v34 = vpop.eup %903  ;;  %v656_v35 = vsub.f32 1.0, %v902_v31  ;;  %v658_v36 = vmul.f32 %v654_v25, %v1034_v29  ;;  %v664_v37 = vmul.f32 %v902_v31, %v894_v21 }
 0x196   : > { %v657_v38 = vsub.f32 1.0, %v904_v34  ;;  %v659_v39 = vmul.f32 %v655_v32, %v1030_v27  ;;  %v665_v40 = vmul.f32 %v904_v34, %v896_v22 }
 0x197   : > { %v666_v41 = vadd.f32 %v662_v26, %v658_v36  ;;  %v660_v42 = vmul.f32 %v656_v35, %v1036_v30 }
 0x198   : > { %v667_v43 = vadd.f32 %v663_v33, %v659_v39  ;;  %v661_v44 = vmul.f32 %v657_v38, %v1032_v28 }
 0x199   : > { %670 = vst [vmem:[%s392_s19] sm:$0xff] %v666_v41  ;;  %v668_v45 = vadd.f32 %v664_v37, %v660_v42 }
 0x19a   : > { %671 = vst [vmem:[%s392_s19 + $0x8] sm:$0xff] %v667_v43  ;;  %v669_v29 = vadd.f32 %v665_v40, %v661_v44 }
 0x19b   : > { %672 = vst [vmem:[%s392_s19 + $0x10] sm:$0xff] %v668_v45 }
 0x19c   : > { %673 = vst [vmem:[%s392_s19 + $0x18] sm:$0xff] %v669_v29 }
 0x19d PF: > { %s17_s26 = sadd.s32 1, %s927_s26   ;;  %s1075_s24 = smov %s923_s25 }
 0x19e   : > { %p14_p5 = scmp.ge.s32.totalorder %s17_s26, 4   ;;  %s1076_s25 = smov %s1078_s27 }
 0x1a0   :  { %16 = sbr.rel (!%p14_p5) target bundleno = 2 (0x2), region = 87 }

</bundles_post_ra>
